<compile_context>
chip_gen: v7x
topology: tpu7x:2x2x1
jax: 0.10.0
libtpu: 0.0.40
codegen_flags: <defaults>
</compile_context>

<pallas_src>
import functools
import math

import jax
import jax.numpy as jnp
from jax.experimental import pallas as pl
from jax.experimental.pallas import tpu as pltpu

EPS = 1e-5


def _residual_kernel(x_ref, w_ref, b_ref, gamma_ref, beta_ref, out_ref, *,
                     n_pass, tile_cols, inv_b, matmul_dtype):
    """One grid step = one (B, tile_cols) column tile of the concat output."""
    j = pl.program_id(0)

    # ---- passthrough tiles: out[:, j*T:(j+1)*T] = x[:, j*T:(j+1)*T] ---------
    @pl.when(j < n_pass)
    def _():
        start = pl.multiple_of(j * tile_cols, tile_cols)   # lane-aligned slice
        out_ref[...] = x_ref[:, pl.ds(start, tile_cols)].astype(out_ref.dtype)

    # ---- activation tiles: fused Linear + BatchNorm1d(train) + ReLU --------
    @pl.when(j >= n_pass)
    def _():
        x = x_ref[...]                                     # [B, I]
        w = w_ref[...]                                     # [I, T]
        if matmul_dtype is not None:                       # bf16 MXU path
            x = x.astype(matmul_dtype)
            w = w.astype(matmul_dtype)
        h = jnp.dot(x, w, preferred_element_type=jnp.float32)   # [B, T] f32
        h = h + b_ref[...]                                 # broadcast [1, T]

        # One-pass batch statistics over the full batch (exact, per-feature).
        s1 = jnp.sum(h, axis=0, keepdims=True)             # [1, T]
        s2 = jnp.sum(h * h, axis=0, keepdims=True)         # [1, T]
        mean = s1 * inv_b
        var = jnp.maximum(s2 * inv_b - mean * mean, 0.0)   # clamp: cancellation
        inv_std = jax.lax.rsqrt(var + EPS)

        # Fold BN affine into a single scale/shift (2 VALU ops per element).
        scale = gamma_ref[...] * inv_std                   # [1, T]
        shift = beta_ref[...] - mean * scale               # [1, T]

        out_ref[...] = jnp.maximum(h * scale + shift, 0.0).astype(out_ref.dtype)


def residual_forward(x, w_t, b, gamma, beta, *, matmul_dtype=None):
    """x: [B, I], w_t: [I, O] (pre-transposed Linear weight), b/gamma/beta: [O].

    Returns concat([x, relu(bn(fc(x)))], axis=1) of shape [B, I + O].
    Set matmul_dtype=jnp.bfloat16 on v6e/v7x to halve HBM weight traffic.
    """
    B, I = x.shape
    O = w_t.shape[1]
    assert w_t.shape == (I, O), w_t.shape
    assert B % 8 == 0, "batch must be a multiple of 8 (f32 sublane tile)"
    assert I % 128 == 0 and O % 128 == 0, "I and O must be multiples of 128"

    # Column tile: largest lane multiple dividing both I and O, capped so a
    # double-buffered W tile stays well inside scoped VMEM.
    g = math.gcd(I, O)
    tile_cols = None
    for cand in (512, 256, 128):
        if g % cand == 0 and 2 * I * cand * 4 <= (8 << 20):
            tile_cols = cand
            break
    assert tile_cols is not None, "need a common 128-multiple column tile"

    n_pass = I // tile_cols           # passthrough tiles (x copy)
    n_act = O // tile_cols            # activation tiles (Linear+BN+ReLU)
    grid = (n_pass + n_act,)

    # 1-D params as [1, O] rows so they map onto (sublane, lane) tiles.
    b2 = b.reshape(1, O)
    g2 = gamma.reshape(1, O)
    be2 = beta.reshape(1, O)

    # Passthrough steps clamp to W column block 0 (re-used, no extra DMA).
    def act_col(j):
        return jnp.maximum(j - n_pass, 0)

    # Explicit VMEM budget: x (resident) + double-buffered W/param/out tiles.
    vmem_est = (2 * B * I * 4
                + 2 * (I * tile_cols * 4 + 3 * tile_cols * 4)
                + 2 * B * tile_cols * 4)
    vmem_limit = int(min(max(2 * vmem_est, 16 << 20), 60 << 20))  # safe on v7x

    kernel = functools.partial(
        _residual_kernel,
        n_pass=n_pass, tile_cols=tile_cols, inv_b=1.0 / B,
        matmul_dtype=matmul_dtype)

    return pl.pallas_call(
        kernel,
        out_shape=jax.ShapeDtypeStruct((B, I + O), x.dtype),
        grid=grid,
        in_specs=[
            pl.BlockSpec((B, I), lambda j: (0, 0)),                    # x (resident)
            pl.BlockSpec((I, tile_cols), lambda j: (0, act_col(j))),   # W tile
            pl.BlockSpec((1, tile_cols), lambda j: (0, act_col(j))),   # bias
            pl.BlockSpec((1, tile_cols), lambda j: (0, act_col(j))),   # gamma
            pl.BlockSpec((1, tile_cols), lambda j: (0, act_col(j))),   # beta
        ],
        out_specs=pl.BlockSpec((B, tile_cols), lambda j: (0, j)),
        compiler_params=pltpu.CompilerParams(
            dimension_semantics=("parallel",),       # shard tiles across TCs
            vmem_limit_bytes=vmem_limit),
    )(x, w_t, b2, g2, be2)


def residual_reference(x, w_t, b, gamma, beta):
    """Pure-JAX reference of the PyTorch forward (training-mode BN)."""
    h = x @ w_t + b
    mean = jnp.mean(h, axis=0, keepdims=True)
    var = jnp.mean((h - mean) ** 2, axis=0, keepdims=True)
    out = (h - mean) * jax.lax.rsqrt(var + EPS) * gamma + beta
    out = jnp.maximum(out, 0.0)
    return jnp.concatenate([x, out], axis=1)


if __name__ == "__main__":
    # Small shapes consistent with the module: x is [batch, i], Linear(i, o).
    B, I, O = 32, 256, 256

    key = jax.random.PRNGKey(0)
    kx, kw, kb = jax.random.split(key, 3)

    x = jax.random.normal(kx, (B, I), dtype=jnp.float32)

    # Deterministic synthetic parameters (nn.Linear(i, o) / BatchNorm1d(o) init).
    bound = 1.0 / math.sqrt(I)
    w = jax.random.uniform(kw, (O, I), minval=-bound, maxval=bound,
                           dtype=jnp.float32)           # PyTorch weight [O, I]
    b = jax.random.uniform(kb, (O,), minval=-bound, maxval=bound,
                           dtype=jnp.float32)
    gamma = jnp.ones((O,), dtype=jnp.float32)
    beta = jnp.zeros((O,), dtype=jnp.float32)

    w_t = w.T                                            # [I, O] for x @ W

    out = jax.block_until_ready(residual_forward(x, w_t, b, gamma, beta))
    ref = residual_reference(x, w_t, b, gamma, beta)

    assert out.shape == (B, I + O), out.shape
    assert jnp.allclose(out, ref, atol=1e-4, rtol=1e-4), "mismatch vs reference"

    print("KERNEL_OK")
</pallas_src>

<mosaic_0001>
module attributes {stable_mosaic.version = 11 : i64} {
  func.func @_residual_kernel(%arg0: i32, %arg1: memref<32x256xf32, #tpu.memory_space<vmem>>, %arg2: memref<256x256xf32, #tpu.memory_space<vmem>>, %arg3: memref<1x256xf32, #tpu.memory_space<vmem>>, %arg4: memref<1x256xf32, #tpu.memory_space<vmem>>, %arg5: memref<1x256xf32, #tpu.memory_space<vmem>>, %arg6: memref<32x256xf32, #tpu.memory_space<vmem>>) attributes {dimension_semantics = [#tpu.dimension_semantics<parallel>], iteration_bounds = array<i64: 2>, scalar_prefetch = 0 : i64, scratch_operands = 0 : i64, tpu.core_type = #tpu.core_type<tc>, window_params = [{pipeline_mode = #tpu.pipeline_mode<synchronous>, transform_indices = @transform_0, window_bounds = array<i64: 32, 256>}, {transform_indices = @transform_1, window_bounds = array<i64: 256, 256>}, {transform_indices = @transform_2, window_bounds = array<i64: 1, 256>}, {transform_indices = @transform_3, window_bounds = array<i64: 1, 256>}, {transform_indices = @transform_4, window_bounds = array<i64: 1, 256>}, {transform_indices = @transform_5, window_bounds = array<i64: 32, 256>}]} {
    %c1_i32 = arith.constant 1 : i32
    %0 = arith.cmpi slt, %arg0, %c1_i32 : i32
    %1 = arith.extui %0 : i1 to i32
    %c0_i32 = arith.constant 0 : i32
    %2 = arith.cmpi ne, %1, %c0_i32 : i32
    scf.if %2 {
      %c256_i32 = arith.constant 256 : i32
      %6 = arith.muli %arg0, %c256_i32 : i32
      %7 = tpu.assume_multiple %6, 256 : i32
      %c0 = arith.constant 0 : index
      %8 = arith.index_cast %7 : i32 to index
      %9 = vector.load %arg1[%c0, %8] : memref<32x256xf32, #tpu.memory_space<vmem>>, vector<32x256xf32>
      %c0_2 = arith.constant 0 : index
      %c0_3 = arith.constant 0 : index
      %10 = vector.load %arg6[%c0_2, %c0_3] : memref<32x256xf32, #tpu.memory_space<vmem>>, vector<32x256xf32>
      tpu.vector_store %arg6[%c0_2, %c0_3], %9 {strides = array<i32>} : memref<32x256xf32, #tpu.memory_space<vmem>>, vector<32x256xf32>,
    } else {
    }
    %c1_i32_0 = arith.constant 1 : i32
    %3 = arith.cmpi sge, %arg0, %c1_i32_0 : i32
    %4 = arith.extui %3 : i1 to i32
    %c0_i32_1 = arith.constant 0 : i32
    %5 = arith.cmpi ne, %4, %c0_i32_1 : i32
    scf.if %5 {
      %c0 = arith.constant 0 : index
      %c0_2 = arith.constant 0 : index
      %6 = vector.load %arg1[%c0, %c0_2] : memref<32x256xf32, #tpu.memory_space<vmem>>, vector<32x256xf32>
      %c0_3 = arith.constant 0 : index
      %c0_4 = arith.constant 0 : index
      %7 = vector.load %arg2[%c0_3, %c0_4] : memref<256x256xf32, #tpu.memory_space<vmem>>, vector<256x256xf32>
      %cst = arith.constant dense<0.000000e+00> : vector<32x256xf32>
      %8 = tpu.matmul %6, %7, %cst {dimension_numbers = #tpu.dot_dimension_numbers<[1], [0], [0], [1], [0, 0, 1, 1], [], []>} : vector<32x256xf32>, vector<256x256xf32>, vector<32x256xf32> -> vector<32x256xf32>
      %c0_5 = arith.constant 0 : index
      %c0_6 = arith.constant 0 : index
      %9 = vector.load %arg3[%c0_5, %c0_6] : memref<1x256xf32, #tpu.memory_space<vmem>>, vector<1x256xf32>
      %10 = vector.broadcast %9 : vector<1x256xf32> to vector<32x256xf32>
      %11 = arith.addf %8, %10 : vector<32x256xf32>
      %cst_7 = arith.constant dense<0.000000e+00> : vector<256xf32>
      %12 = vector.multi_reduction <add>, %11, %cst_7 [0] : vector<32x256xf32> to vector<256xf32>
      %13 = vector.shape_cast %12 : vector<256xf32> to vector<1x256xf32>
      %14 = arith.mulf %11, %11 : vector<32x256xf32>
      %cst_8 = arith.constant dense<0.000000e+00> : vector<256xf32>
      %15 = vector.multi_reduction <add>, %14, %cst_8 [0] : vector<32x256xf32> to vector<256xf32>
      %16 = vector.shape_cast %15 : vector<256xf32> to vector<1x256xf32>
      %cst_9 = arith.constant 3.125000e-02 : f32
      %17 = vector.broadcast %cst_9 : f32 to vector<1x256xf32>
      %18 = arith.mulf %13, %17 : vector<1x256xf32>
      %cst_10 = arith.constant 3.125000e-02 : f32
      %19 = vector.broadcast %cst_10 : f32 to vector<1x256xf32>
      %20 = arith.mulf %16, %19 : vector<1x256xf32>
      %21 = arith.mulf %18, %18 : vector<1x256xf32>
      %22 = arith.subf %20, %21 : vector<1x256xf32>
      %cst_11 = arith.constant 0.000000e+00 : f32
      %23 = vector.broadcast %cst_11 : f32 to vector<1x256xf32>
      %24 = arith.maximumf %22, %23 : vector<1x256xf32>
      %cst_12 = arith.constant 9.99999974E-6 : f32
      %25 = vector.broadcast %cst_12 : f32 to vector<1x256xf32>
      %26 = arith.addf %24, %25 : vector<1x256xf32>
      %27 = math.rsqrt %26 : vector<1x256xf32>
      %c0_13 = arith.constant 0 : index
      %c0_14 = arith.constant 0 : index
      %28 = vector.load %arg4[%c0_13, %c0_14] : memref<1x256xf32, #tpu.memory_space<vmem>>, vector<1x256xf32>
      %29 = arith.mulf %28, %27 : vector<1x256xf32>
      %c0_15 = arith.constant 0 : index
      %c0_16 = arith.constant 0 : index
      %30 = vector.load %arg5[%c0_15, %c0_16] : memref<1x256xf32, #tpu.memory_space<vmem>>, vector<1x256xf32>
      %31 = arith.mulf %18, %29 : vector<1x256xf32>
      %32 = arith.subf %30, %31 : vector<1x256xf32>
      %33 = vector.broadcast %29 : vector<1x256xf32> to vector<32x256xf32>
      %34 = arith.mulf %11, %33 : vector<32x256xf32>
      %35 = vector.broadcast %32 : vector<1x256xf32> to vector<32x256xf32>
      %36 = arith.addf %34, %35 : vector<32x256xf32>
      %cst_17 = arith.constant 0.000000e+00 : f32
      %37 = vector.broadcast %cst_17 : f32 to vector<32x256xf32>
      %38 = arith.maximumf %36, %37 : vector<32x256xf32>
      %c0_18 = arith.constant 0 : index
      %c0_19 = arith.constant 0 : index
      %39 = vector.load %arg6[%c0_18, %c0_19] : memref<32x256xf32, #tpu.memory_space<vmem>>, vector<32x256xf32>
      tpu.vector_store %arg6[%c0_18, %c0_19], %38 {strides = array<i32>} : memref<32x256xf32, #tpu.memory_space<vmem>>, vector<32x256xf32>,
    } else {
    }
    return
  }
  func.func @transform_0(%arg0: i32) -> (i32, i32) {
    %c0_i32 = arith.constant 0 : i32
    %c0_i32_0 = arith.constant 0 : i32
    %c0_i32_1 = arith.constant 0 : i32
    return %c0_i32, %c0_i32_0 : i32, i32
  }
  func.func @transform_1(%arg0: i32) -> (i32, i32) {
    %c1_i32 = arith.constant 1 : i32
    %0 = arith.subi %arg0, %c1_i32 : i32
    %c0_i32 = arith.constant 0 : i32
    %1 = arith.maxsi %0, %c0_i32 : i32
    %c0_i32_0 = arith.constant 0 : i32
    %c0_i32_1 = arith.constant 0 : i32
    return %c0_i32_0, %1 : i32, i32
  }
  func.func @transform_2(%arg0: i32) -> (i32, i32) {
    %c1_i32 = arith.constant 1 : i32
    %0 = arith.subi %arg0, %c1_i32 : i32
    %c0_i32 = arith.constant 0 : i32
    %1 = arith.maxsi %0, %c0_i32 : i32
    %c0_i32_0 = arith.constant 0 : i32
    %c0_i32_1 = arith.constant 0 : i32
    return %c0_i32_0, %1 : i32, i32
  }
  func.func @transform_3(%arg0: i32) -> (i32, i32) {
    %c1_i32 = arith.constant 1 : i32
    %0 = arith.subi %arg0, %c1_i32 : i32
    %c0_i32 = arith.constant 0 : i32
    %1 = arith.maxsi %0, %c0_i32 : i32
    %c0_i32_0 = arith.constant 0 : i32
    %c0_i32_1 = arith.constant 0 : i32
    return %c0_i32_0, %1 : i32, i32
  }
  func.func @transform_4(%arg0: i32) -> (i32, i32) {
    %c1_i32 = arith.constant 1 : i32
    %0 = arith.subi %arg0, %c1_i32 : i32
    %c0_i32 = arith.constant 0 : i32
    %1 = arith.maxsi %0, %c0_i32 : i32
    %c0_i32_0 = arith.constant 0 : i32
    %c0_i32_1 = arith.constant 0 : i32
    return %c0_i32_0, %1 : i32, i32
  }
  func.func @transform_5(%arg0: i32) -> (i32, i32) {
    %c0_i32 = arith.constant 0 : i32
    %c0_i32_0 = arith.constant 0 : i32
    return %c0_i32, %arg0 : i32, i32
  }
}

</mosaic_0001>

<bundles_post_ra>
// kernel: tpu_custom_call.1
= control target key start
LH: loop header
LB: loop body
LE: loop exit
PB: predicated region body
PF: predicated region fallthrough
CT: control target
= control target key end

     0   :  { %s1712_s0 = inlined_call_operand.hbm [shape: f32[32,256], index: 0, kind: input, shape index: {}]   ;;  %s1713_s1 = inlined_call_operand.hbm [shape: f32[256,256], index: 1, kind: input, shape index: {}]   ;;  %s1714_s2 = inlined_call_operand.vmem [shape: f32[1,256], index: 2, kind: input, shape index: {}]   ;;  %s1715_s3 = inlined_call_operand.vmem [shape: f32[1,256], index: 3, kind: input, shape index: {}]   ;;  %s1716_s4 = inlined_call_operand.vmem [shape: f32[1,256], index: 4, kind: input, shape index: {}]   ;;  %s1717_s5 = inlined_call_operand.hbm [shape: f32[32,512], index: 5, kind: output, shape index: {}]  }
   0x1   :  { %1726 = sst [smem:[#allocation12_spill]] %s1712_s0 }
   0x2   :  { %10 = vsyncpa [#allocation3], 0 }
   0x3   :  { %11 = vsyncpa [#allocation6], 0 }
   0x4   :  { %13 = vsyncpa [#allocation6 + $0x1], 0 }
   0x5   :  { %14 = vsyncpa [#allocation4], 0 }
   0x6   :  { %16 = vsyncpa [#allocation4 + $0x1], 0  ;;  %s1293_s18 = smov 0   ;;  %s1295_s19 = smov 0  }
   0x7   :  { %s1297_s20 = smov 0   ;;  %s1299_s21 = smov 0  }
   0x8   :  { %s1301_s22 = smov 0   ;;  %s1303_s23 = smov 0  }
   0x9   :  { %s1305_s24 = smov 0  }
   0xa LB: > { %s1327_s25 = sadd.s32 4294967295, %s1252_s24   ;;  %s876_s26 = sadd.s32 4294967294, %s1252_s24   ;;  %s1252_s24 = sphi %s1305_s24, %s1746_s24   ;;  %s1248_s23 = sphi %s1303_s23, %s1752_s23   ;;  %s1244_s22 = sphi %s1301_s22, %s1751_s22   ;;  %s1240_s21 = sphi %s1299_s21, %s1750_s21   ;;  %s1236_s20 = sphi %s1297_s20, %s1749_s20   ;;  %s1232_s19 = sphi %s1295_s19, %s1748_s19   ;;  %s1228_s18 = sphi %s1293_s18, %s1747_s18  }
   0xb   : > { %p69_p0 = scmp.ne.s32.totalorder %s1244_s22, %s1240_s21  ;;  %p1718_p1 = scmp.eq.s32.totalorder %s1327_s25, 0 }
   0xc   : > { %p188_p2 = scmp.ne.s32.totalorder %s1236_s20, %s1232_s19  ;;  %p189_p3 = scmp.eq.s32.totalorder %s1327_s25, 1 }
   0xd   : > { %p1337_p4 = por %p1718_p1, %p69_p0  ;;  %p194_p5 = scmp.ne.s32.totalorder %s1232_s19, %s1228_s18 }
   0xe   : > { %p1343_p6 = por %p189_p3, %p188_p2  ;;  %p195_p7 = scmp.eq.s32.totalorder %s876_s26, 1 }
   0xf   : > { %s1727_s27 = scalar_select %p1337_p4, 1, 0 }
  0x10   : > { %s1728_s28 = scalar_select %p1343_p6, 1, 0 }
  0x11   : > { %p885_p8 = scmp.ge.s32.totalorder %s1252_s24, 1  ;;  %p202_p9 = scmp.lt.s32.totalorder %s1252_s24, 3 }
  0x12   : > { %p1349_p10 = por %p195_p7, %p194_p5  ;;  %s1254_s6 = smov [#allocation2]  }
  0x13   : > { %p1353_p11 = pnand %p885_p8, %p202_p9  ;;  %s214_s7 = sshll.u32 %s1254_s6, 4  ;;  %s215_s7 = int_to_ptr.vmem [resolvable:$true] %s214_s7 }
  0x14   : > { %s1729_s29 = scalar_select %p1349_p10, 1, 0 }
  0x15   : > { %s1730_s30 = scalar_select %p1353_p11, 1, 0 }
  0x16   : > { %p1017_p12 = pneg %p1353_p11  ;;  %s1367_s9 = sadd.s32 1, %s1252_s24  }
  0x17   : > { %1732 = sst [smem:[#allocation11_spill]] %s1367_s9  ;;  %s1733_s0 = sld [smem:[#allocation12_spill]] }
  0x18   : > { %p1362_p0 = pnand %p1017_p12, %p1718_p1 }
  0x1a   : > { %p1102_p5 = pneg %p1362_p0 }
  0x1d   : > { %s1100_s12 = scalar_lea.hbm %s1733_s0, 1024 }
  0x1e   : > { %p1101_p3 = scmp.ne.s32.totalorder %s1733_s0, %s1100_s12  ;;  %p1107_p9 = scmp.lt.u32.totalorder %s1100_s12, %s1733_s0 }
  0x20   : > { %p1103_p7 = pnand %p1102_p5, %p1101_p3 }
  0x22   : > { %p1104_p8 = pneg %p1103_p7 }
  0x24   : > { %p1109_p12 = pnand %p1107_p9, %p1104_p8 }
  0x26   : > { %1112 = shalt.err (!%p1109_p12)
}
  0x27   : > { %s1113_s17 = scalar_lea.vmem %s215_s7, 1024  ;;  %p1121_p10 = scmp.lt.s32.totalorder %s215_s7, %s215_s7 }
  0x28   : > { %p1114_p13 = scmp.ne.s32.totalorder %s215_s7, %s1113_s17  ;;  %p1122_p6 = scmp.lt.s32.totalorder %s1113_s17, %s1113_s17 }
  0x2a   : > { %p1116_p1 = pnand %p1114_p13, %p1102_p5  ;;  %p1123_p4 = por %p1122_p6, %p1121_p10 }
  0x2c   : > { %p1117_p2 = pneg %p1116_p1 }
  0x2e   : > { %p1124_p11 = pnand %p1123_p4, %p1117_p2 }
  0x30   : > { %1127 = shalt.err (!%p1124_p11)
}
  0x31   : > { %s1722_s21 = smov 256   ;;  %s1723_s26 = smov 16  }
  0x32   : > { %1020 = dma.hbm_to_vmem [thread:$0]  (!%p1362_p0), %s1733_s0, 1024, %s215_s7, [#allocation3], %s1722_s21, %s1722_s21, %s1723_s26  }
  0x33   : > { %p1734_p1 = scmp.gt.s32.totalorder %s1327_s25, 0  ;;  %s878_s12 = sadd.s32 4294967295, %s1367_s9 }
  0x34   : > { %s56_s13 = sadd.s32 1, %s1248_s23  ;;  %p51_p4 = scmp.gt.s32.totalorder %s878_s12, 0 }
  0x35   : > { %s49_s11 = scalar_select %p1734_p1, %s1327_s25, 0 }
  0x36   : > { %p63_p6 = scmp.ne.s32.totalorder %s1248_s23, %s1244_s22  ;;  %p64_p10 = scmp.eq.s32.totalorder %s1252_s24, 0 }
  0x37   : > { %s175_s14 = ssub.s32 %s1252_s24, %s1367_s9  ;;  %s1754_s12 = smov (!%p51_p4, %s878_s12), 0 }
  0x38   : > { %p1399_p11 = por %p64_p10, %p63_p6  ;;  %p176_p13 = scmp.eq.s32.totalorder %s175_s14, 0 }
  0x39   : > { %s53_s15 = ssub.s32 %s49_s11, %s1754_s12  ;;  %s178_s16 = sadd.s32 1, %s1236_s20 }
  0x3a   : > { %p54_p0 = scmp.eq.s32.totalorder %s53_s15, 0  ;;  %p1030_p2 = scmp.lt.s32.totalorder %s1252_s24, 2 }
  0x3b   : > { %s1406_s7 = scalar_select %p176_p13, %s1236_s20, %s178_s16  }
  0x3c   : > { %s1409_s17 = scalar_select %p54_p0, %s1248_s23, %s56_s13  }
  0x3d   : > { %s228_s6 = sand.u32 1, %s1248_s23   ;;  %s911_s10 = sshll.u32 %s49_s11, 8 }
  0x3e   : > { %s888_s21 = sshll.u32 %s228_s6, 9  ;;  %s1415_s9 = scalar_lea.hbm %s1713_s1, %s911_s10 }
  0x3f   : > { %s232_s12 = scalar_lea.vmem [#allocation5], %s888_s21  ;;  %p1419_p3 = pnand %p1030_p2, %p1399_p11 }
  0x40   : > { %s242_s14 = sshll.u32 %s232_s12, 4  ;;  %s1425_s11 = scalar_lea.sflag [#allocation6], %s228_s6  ;;  %s1423_s14 = int_to_ptr.vmem [resolvable:$true] %s242_s14 }
  0x41   : > { %s1128_s0 = scalar_lea.hbm %s1415_s9, 8192  ;;  %p1130_p7 = pneg %p1419_p3 }
  0x42   : > { %p1129_p5 = scmp.ne.s32.totalorder %s1415_s9, %s1128_s0  ;;  %s1133_s13 = scalar_lea.hbm %s1713_s1, 8192 }
  0x43   : > { %p1134_p12 = scmp.lt.u32.totalorder %s1415_s9, %s1713_s1  ;;  %p1135_p1 = scmp.lt.u32.totalorder %s1133_s13, %s1128_s0 }
  0x44   : > { %p1131_p8 = pnand %p1130_p7, %p1129_p5  ;;  %p1137_p6 = scmp.lt.u32.totalorder %s1128_s0, %s1415_s9 }
  0x45   : > { %p1136_p4 = por %p1135_p1, %p1134_p12 }
  0x46   : > { %p1132_p9 = pneg %p1131_p8 }
  0x47   : > { %p1138_p10 = por %p1137_p6, %p1136_p4 }
  0x49   : > { %p1139_p11 = pnand %p1138_p10, %p1132_p9 }
  0x4b   : > { %1142 = shalt.err (!%p1139_p11)
}
  0x4c   : > { %s1143_s6 = scalar_lea.vmem %s1423_s14, 8192  ;;  %s1257_s10 = smov [#allocation5]  }
  0x4d   : > { %p1144_p13 = scmp.ne.s32.totalorder %s1423_s14, %s1143_s6  ;;  %s1148_s12 = sshll.u32 %s1257_s10, 4  ;;  %s1149_s12 = int_to_ptr.vmem [resolvable:$false] %s1148_s12 }
  0x4e   : > { %s1150_s21 = scalar_lea.vmem %s1149_s12, 16384  ;;  %p1151_p5 = scmp.lt.s32.totalorder %s1423_s14, %s1149_s12 }
  0x4f   : > { %p1146_p0 = pnand %p1144_p13, %p1130_p7  ;;  %p1152_p8 = scmp.lt.s32.totalorder %s1150_s21, %s1143_s6 }
  0x51   : > { %p1147_p2 = pneg %p1146_p0  ;;  %p1153_p12 = por %p1152_p8, %p1151_p5 }
  0x53   : > { %p1154_p1 = pnand %p1153_p12, %p1147_p2 }
  0x55   : > { %1157 = shalt.err (!%p1154_p1)
}
  0x56   : > { %s1737_s0 = smov 16   ;;  %s1738_s26 = smov 256  }
  0x57   : > { %1024 = dma.hbm_to_vmem [thread:$0]  (!%p1419_p3), %s1415_s9, 8192, %s1423_s14, %s1425_s11, %s1738_s26, %s1738_s26, %s1737_s0  }
  0x58   : > { %p1739_p7 = scmp.ne.s32.totalorder %s1730_s30, 0 }
  0x59   : > { %p1740_p9 = scmp.eq.s32.totalorder (!%p1739_p7), %s1327_s25, 0 }
  0x5a   : > { %296 = sbr.rel (%p1739_p7) target bundleno = 500 (0x1f4), region = 40 }
  0x61   : > { %1215 = dma.done.wait (%p1740_p9), [#allocation3], 1024   ;;  %p1741_p4 = pmov %p1740_p9 }
  0x62   : > { %s302_s13 = sand.u32 1, %s1244_s22   ;;  %p1742_p6 = scmp.ne.s32.totalorder %s1727_s27, 0 }
  0x63   : > { %1217 = vsyncadd (%p1741_p4), [#allocation3], 4294966272  ;;  %s894_s15 = sshll.u32 %s302_s13, 9  ;;  %s303_s8 = scalar_lea.sflag [#allocation6], %s302_s13 }
  0x64   : > { %s1463_s16 = scalar_lea.vmem [#allocation5], %s894_s15 }
  0x65   : > { %1219 = dma.done.wait (%p1742_p6), %s303_s8, 8192  }
  0x66   : > { %1221 = vsyncadd (%p1742_p6), %s303_s8, 4294959104  ;;  %s351_s30 = sand.u32 1, %s1232_s19   ;;  %s896_s9 = sadd.s32 4294967295, %s1327_s25 }
  0x67   : > { %s895_s14 = sshll.u32 %s351_s30, 6  ;;  %p359_p3 = scmp.gt.s32.totalorder %s896_s9, 0 }
  0x68   : > { %s1487_s8 = scalar_lea.vmem [#allocation7], %s895_s14  ;;  %p902_p11 = scmp.ge.s32.totalorder %s1327_s25, 1 }
  0x69   : > { %s1756_s9 = smov (!%p359_p3, %s896_s9), 0 }
  0x6a   : > { %s897_s11 = sshll.u32 %s1756_s9, 1  ;;  %395 = sbr.rel (%p902_p11) target bundleno = 117 (0x75), region = 52 }
  0x6b   : > { %p362_p10 = scmp.lt.s32.totalorder %s897_s11, 1  ;;  %s903_s9 = sshll.u32 (!%p902_p11), %s1327_s25, 8 }
  0x6c   : > { %s397_s6 = sshra.s32 (!%p902_p11), %s903_s9, 7 }
  0x6d   : > { %s1758_s11 = smov (!%p362_p10, %s897_s11), 1  ;;  %s904_s10 = sshll.u32 (!%p902_p11), %s397_s6, 3 }
  0x6e   : > { %s364_s27 = scalar_lea.vmem %s1714_s2, %s1758_s11  ;;  %s375_s0 = scalar_lea.vmem %s1715_s3, %s1758_s11 }
  0x6f   : > { %s386_s15 = scalar_lea.vmem %s1716_s4, %s1758_s11  ;;  %s400_s12 = scalar_lea.vmem (!%p902_p11), [#allocation2], %s904_s10 }
  0x70   : > { %v401_v0 = vld [vmem:[%s400_s12] sm:$0xff] (!%p902_p11)  ;;  %v402_v1 = vld [vmem:[%s400_s12 + $0x8] sm:$0xff] (!%p902_p11)  ;;  %v403_v2 = vld [vmem:[%s400_s12 + $0x10] sm:$0xff] (!%p902_p11) }
  0x71   : > { %409 = vst [vmem:[%s1487_s8] sm:$0xff] %v401_v0  ;;  %410 = vst [vmem:[%s1487_s8 + $0x8] sm:$0xff] %v402_v1  ;;  %v404_v3 = vld [vmem:[%s400_s12 + $0x18] sm:$0xff]  ;;  %v405_v4 = vld [vmem:[%s400_s12 + $0x20] sm:$0xff] }
  0x72   : > { %411 = vst [vmem:[%s1487_s8 + $0x10] sm:$0xff] %v403_v2  ;;  %v406_v5 = vld [vmem:[%s400_s12 + $0x28] sm:$0xff]  ;;  %412 = vst [vmem:[%s1487_s8 + $0x18] sm:$0xff] %v404_v3  ;;  %v407_v6 = vld [vmem:[%s400_s12 + $0x30] sm:$0xff] }
  0x73   : > { %413 = vst [vmem:[%s1487_s8 + $0x20] sm:$0xff] %v405_v4  ;;  %414 = vst [vmem:[%s1487_s8 + $0x28] sm:$0xff] %v406_v5  ;;  %v408_v7 = vld [vmem:[%s400_s12 + $0x38] sm:$0xff] }
  0x74   : > { %415 = vst [vmem:[%s1487_s8 + $0x30] sm:$0xff] %v407_v6  ;;  %416 = vst [vmem:[%s1487_s8 + $0x38] sm:$0xff] %v408_v7 }
  0x75 PF: > { %p905_p13 = scmp.lt.s32.totalorder %s1327_s25, 1 }
  0x76   : > { %v430_v8 = vld [vmem:[%s1463_s16 + $0x8] sm:$0xff] (!%p905_p13)  ;;  %v432_v9 = vld [vmem:[%s1463_s16 + $0x18] sm:$0xff] (!%p905_p13)  ;;  %v429_v10 = vld [vmem:[%s1463_s16] sm:$0xff] (!%p905_p13) }
  0x77   : > { %420 = sbr.rel (%p905_p13) target bundleno = 473 (0x1d9), region = 56  ;;  %v913_v11 = vpack.c.bf16 (!%p905_p13), %v432_v9, %v430_v8  ;;  %v431_v12 = vld [vmem:[%s1463_s16 + $0x10] sm:$0xff] (!%p905_p13)  ;;  %v434_v13 = vld [vmem:[%s1463_s16 + $0x28] sm:$0xff] (!%p905_p13)  ;;  %v436_v14 = vld [vmem:[%s1463_s16 + $0x38] sm:$0xff] (!%p905_p13) }
  0x78   : > { %v915_v15 = vpack.c.bf16 (!%p905_p13), %v431_v12, %v429_v10  ;;  %v917_v16 = vpack.c.bf16 (!%p905_p13), %v436_v14, %v434_v13  ;;  %v433_v17 = vld [vmem:[%s1463_s16 + $0x20] sm:$0xff] (!%p905_p13)  ;;  %v435_v18 = vld [vmem:[%s1463_s16 + $0x30] sm:$0xff] (!%p905_p13)  ;;  %v438_v19 = vld [vmem:[%s1463_s16 + $0x48] sm:$0xff] (!%p905_p13) }
  0x79   : > { %914 = vmatprep.subr.bf16.mxu0 (!%p905_p13), %v913_v11  ;;  %977 = vmatprep.subr.bf16.mxu1 (!%p905_p13), %v913_v11  ;;  %v440_v20 = vld [vmem:[%s1463_s16 + $0x58] sm:$0xff] (!%p905_p13)  ;;  %v919_v21 = vpack.c.bf16 (!%p905_p13), %v435_v18, %v433_v17  ;;  %v437_v23 = vld [vmem:[%s1463_s16 + $0x40] sm:$0xff] (!%p905_p13)  ;;  %v439_v24 = vld [vmem:[%s1463_s16 + $0x50] sm:$0xff] (!%p905_p13) }
  0x7a   : > { %916 = vmatpush1.bf16.msra.mxu0 (!%p905_p13), %v915_v15  ;;  %993 = vmatpush1.bf16.msra.mxu1 (!%p905_p13), %v915_v15  ;;  %v921_v22 = vpack.c.bf16 (!%p905_p13), %v440_v20, %v438_v19  ;;  %v442_v25 = vld [vmem:[%s1463_s16 + $0x68] sm:$0xff] (!%p905_p13)  ;;  %v444_v26 = vld [vmem:[%s1463_s16 + $0x78] sm:$0xff] (!%p905_p13)  ;;  %v923_v27 = vpack.c.bf16 (!%p905_p13), %v439_v24, %v437_v23  ;;  %v441_v29 = vld [vmem:[%s1463_s16 + $0x60] sm:$0xff] (!%p905_p13) }
  0x7b   : > { %918 = vmatprep.subr.bf16.mxu0 (!%p905_p13), %v917_v16  ;;  %978 = vmatprep.subr.bf16.mxu1 (!%p905_p13), %v917_v16  ;;  %v925_v28 = vpack.c.bf16 (!%p905_p13), %v444_v26, %v442_v25  ;;  %v443_v30 = vld [vmem:[%s1463_s16 + $0x70] sm:$0xff] (!%p905_p13)  ;;  %v446_v31 = vld [vmem:[%s1463_s16 + $0x88] sm:$0xff] (!%p905_p13)  ;;  %v448_v32 = vld [vmem:[%s1463_s16 + $0x98] sm:$0xff] (!%p905_p13) }
  0x7c   : > { %v927_v33 = vpack.c.bf16 (!%p905_p13), %v443_v30, %v441_v29  ;;  %v929_v34 = vpack.c.bf16 (!%p905_p13), %v448_v32, %v446_v31  ;;  %v445_v35 = vld [vmem:[%s1463_s16 + $0x80] sm:$0xff] (!%p905_p13)  ;;  %v447_v36 = vld [vmem:[%s1463_s16 + $0x90] sm:$0xff] (!%p905_p13)  ;;  %v450_v37 = vld [vmem:[%s1463_s16 + $0xa8] sm:$0xff] (!%p905_p13) }
  0x7d   : > { %v452_v38 = vld [vmem:[%s1463_s16 + $0xb8] sm:$0xff] (!%p905_p13)  ;;  %v931_v39 = vpack.c.bf16 (!%p905_p13), %v447_v36, %v445_v35  ;;  %v449_v41 = vld [vmem:[%s1463_s16 + $0xa0] sm:$0xff] (!%p905_p13)  ;;  %v451_v42 = vld [vmem:[%s1463_s16 + $0xb0] sm:$0xff] (!%p905_p13) }
  0x7e   : > { %920 = vmatpush1.bf16.msra.mxu0 %v919_v21  ;;  %994 = vmatpush1.bf16.msra.mxu1 %v919_v21  ;;  %v933_v40 = vpack.c.bf16 %v452_v38, %v450_v37  ;;  %v454_v43 = vld [vmem:[%s1463_s16 + $0xc8] sm:$0xff]  ;;  %v456_v44 = vld [vmem:[%s1463_s16 + $0xd8] sm:$0xff]  ;;  %v935_v45 = vpack.c.bf16 %v451_v42, %v449_v41  ;;  %v453_v47 = vld [vmem:[%s1463_s16 + $0xc0] sm:$0xff] }
  0x7f   : > { %922 = vmatprep.subr.bf16.mxu0 %v921_v22  ;;  %979 = vmatprep.subr.bf16.mxu1 %v921_v22  ;;  %v937_v46 = vpack.c.bf16 %v456_v44, %v454_v43  ;;  %v455_v48 = vld [vmem:[%s1463_s16 + $0xd0] sm:$0xff]  ;;  %v422_v49 = vld [vmem:[#allocation2 + $0x8] sm:$0xff]  ;;  %v460_v51 = vld [vmem:[%s1463_s16 + $0xf8] sm:$0xff] }
  0x80   : > { %v458_v50 = vld [vmem:[%s1463_s16 + $0xe8] sm:$0xff]  ;;  %569 = vmatprep.mubr.f32.mxu0 %v422_v49  ;;  %v939_v53 = vpack.c.bf16 %v455_v48, %v453_v47  ;;  %v457_v55 = vld [vmem:[%s1463_s16 + $0xe0] sm:$0xff]  ;;  %v459_v56 = vld [vmem:[%s1463_s16 + $0xf0] sm:$0xff]  ;;  %v495_v48 = vlaneseq }
  0x81   : > { %v426_v52 = vld [vmem:[#allocation2 + $0x28] sm:$0xff]  ;;  %v941_v54 = vpack.c.bf16 %v460_v51, %v458_v50  ;;  %v464_v58 = vld [vmem:[%s1463_s16 + $0x118] sm:$0xff]  ;;  %v943_v59 = vpack.c.bf16 %v459_v56, %v457_v55  ;;  %v461_v61 = vld [vmem:[%s1463_s16 + $0x100] sm:$0xff] }
  0x82   : > { %924 = vmatpush1.bf16.msra.mxu0 %v923_v27  ;;  %995 = vmatpush1.bf16.msra.mxu1 %v923_v27  ;;  %v462_v57 = vld [vmem:[%s1463_s16 + $0x108] sm:$0xff]  ;;  %v463_v62 = vld [vmem:[%s1463_s16 + $0x110] sm:$0xff]  ;;  %v468_v0 = vld [vmem:[%s1463_s16 + $0x138] sm:$0xff]  ;;  %v1564_v49 = vshrl.u32 %v495_v48, 7 }
  0x83   : > { %926 = vmatprep.subr.bf16.mxu0 %v925_v28  ;;  %980 = vmatprep.subr.bf16.mxu1 %v925_v28  ;;  %v945_v60 = vpack.c.bf16 %v464_v58, %v462_v57  ;;  %v466_v63 = vld [vmem:[%s1463_s16 + $0x128] sm:$0xff]  ;;  %v947_v1 = vpack.c.bf16 %v463_v62, %v461_v61  ;;  %v465_v3 = vld [vmem:[%s1463_s16 + $0x120] sm:$0xff]  ;;  %v467_v4 = vld [vmem:[%s1463_s16 + $0x130] sm:$0xff] }
  0x84   : > { %581 = vmatprep.mubr.f32.mxu1 %v426_v52  ;;  %v949_v2 = vpack.c.bf16 %v468_v0, %v466_v63  ;;  %v470_v5 = vld [vmem:[%s1463_s16 + $0x148] sm:$0xff]  ;;  %v472_v6 = vld [vmem:[%s1463_s16 + $0x158] sm:$0xff]  ;;  %v951_v7 = vpack.c.bf16 %v467_v4, %v465_v3  ;;  %v469_v9 = vld [vmem:[%s1463_s16 + $0x140] sm:$0xff]  ;;  %v1567_v50 = vsub.s32 0, %v1564_v49  ;;  %v1575_v52 = vsub.s32 1, %v1564_v49 }
  0x85   : > { %v953_v8 = vpack.c.bf16 %v472_v6, %v470_v5  ;;  %v471_v10 = vld [vmem:[%s1463_s16 + $0x150] sm:$0xff]  ;;  %v474_v11 = vld [vmem:[%s1463_s16 + $0x168] sm:$0xff]  ;;  %v476_v12 = vld [vmem:[%s1463_s16 + $0x178] sm:$0xff] }
  0x86   : > { %928 = vmatpush1.bf16.msra.mxu0 %v927_v33  ;;  %996 = vmatpush1.bf16.msra.mxu1 %v927_v33  ;;  %v955_v13 = vpack.c.bf16 %v471_v10, %v469_v9  ;;  %v957_v14 = vpack.c.bf16 %v476_v12, %v474_v11  ;;  %v473_v15 = vld [vmem:[%s1463_s16 + $0x160] sm:$0xff]  ;;  %v475_v16 = vld [vmem:[%s1463_s16 + $0x170] sm:$0xff]  ;;  %v478_v17 = vld [vmem:[%s1463_s16 + $0x188] sm:$0xff] }
  0x87   : > { %930 = vmatprep.subr.bf16.mxu0 %v929_v34  ;;  %981 = vmatprep.subr.bf16.mxu1 %v929_v34  ;;  %v480_v18 = vld [vmem:[%s1463_s16 + $0x198] sm:$0xff]  ;;  %v959_v19 = vpack.c.bf16 %v475_v16, %v473_v15  ;;  %v477_v21 = vld [vmem:[%s1463_s16 + $0x180] sm:$0xff]  ;;  %v479_v22 = vld [vmem:[%s1463_s16 + $0x190] sm:$0xff] }
  0x88   : > { %v961_v20 = vpack.c.bf16 %v480_v18, %v478_v17  ;;  %v482_v23 = vld [vmem:[%s1463_s16 + $0x1a8] sm:$0xff]  ;;  %v484_v24 = vld [vmem:[%s1463_s16 + $0x1b8] sm:$0xff]  ;;  %v963_v25 = vpack.c.bf16 %v479_v22, %v477_v21  ;;  %v481_v27 = vld [vmem:[%s1463_s16 + $0x1a0] sm:$0xff] }
  0x89   : > { %v965_v26 = vpack.c.bf16 %v484_v24, %v482_v23  ;;  %v483_v28 = vld [vmem:[%s1463_s16 + $0x1b0] sm:$0xff]  ;;  %v486_v29 = vld [vmem:[%s1463_s16 + $0x1c8] sm:$0xff]  ;;  %v488_v30 = vld [vmem:[%s1463_s16 + $0x1d8] sm:$0xff] }
  0x8a   : > { %932 = vmatpush1.bf16.msra.mxu0 %v931_v39  ;;  %997 = vmatpush1.bf16.msra.mxu1 %v931_v39  ;;  %v967_v31 = vpack.c.bf16 %v483_v28, %v481_v27  ;;  %v969_v32 = vpack.c.bf16 %v488_v30, %v486_v29  ;;  %v485_v33 = vld [vmem:[%s1463_s16 + $0x1c0] sm:$0xff]  ;;  %v487_v34 = vld [vmem:[%s1463_s16 + $0x1d0] sm:$0xff]  ;;  %v490_v35 = vld [vmem:[%s1463_s16 + $0x1e8] sm:$0xff] }
  0x8b   : > { %934 = vmatprep.subr.bf16.mxu0 %v933_v40  ;;  %982 = vmatprep.subr.bf16.mxu1 %v933_v40  ;;  %v492_v36 = vld [vmem:[%s1463_s16 + $0x1f8] sm:$0xff]  ;;  %v971_v37 = vpack.c.bf16 %v487_v34, %v485_v33  ;;  %v489_v39 = vld [vmem:[%s1463_s16 + $0x1e0] sm:$0xff]  ;;  %v491_v40 = vld [vmem:[%s1463_s16 + $0x1f0] sm:$0xff] }
  0x8c   : > { %v973_v38 = vpack.c.bf16 %v492_v36, %v490_v35  ;;  %v975_v41 = vpack.c.bf16 %v491_v40, %v489_v39  ;;  %v421_v42 = vld [vmem:[#allocation2] sm:$0xff]  ;;  %v424_v44 = vld [vmem:[#allocation2 + $0x18] sm:$0xff]  ;;  %v427_v47 = vld [vmem:[#allocation2 + $0x30] sm:$0xff] }
  0x8d   : > { %v425_v43 = vld [vmem:[#allocation2 + $0x20] sm:$0xff] }
  0x8e   : > { %936 = vmatpush1.bf16.msra.mxu0 %v935_v45  ;;  %998 = vmatpush1.bf16.msra.mxu1 %v935_v45  ;;  %v428_v45 = vld [vmem:[#allocation2 + $0x38] sm:$0xff]  ;;  %v493_v51 = vld [vmem:[%s364_s27] sm:$0x3] }
  0x8f   : > { %938 = vmatprep.subr.bf16.mxu0 %v937_v46  ;;  %983 = vmatprep.subr.bf16.mxu1 %v937_v46  ;;  %v423_v46 = vld [vmem:[#allocation2 + $0x10] sm:$0xff]  ;;  %v502_v55 = vrot.slane %v493_v51, %v1575_v52 }
  0x92   : > { %940 = vmatpush1.bf16.msra.mxu0 %v939_v53  ;;  %999 = vmatpush1.bf16.msra.mxu1 %v939_v53  ;;  %v498_v53 = vrot.slane %v493_v51, %v1567_v50 }
  0x93   : > { %942 = vmatprep.subr.bf16.mxu0 %v941_v54  ;;  %984 = vmatprep.subr.bf16.mxu1 %v941_v54 }
  0x96   : > { %944 = vmatpush1.bf16.msra.mxu0 %v943_v59  ;;  %1000 = vmatpush1.bf16.msra.mxu1 %v943_v59 }
  0x97   : > { %946 = vmatprep.subr.bf16.mxu0 %v945_v60  ;;  %985 = vmatprep.subr.bf16.mxu1 %v945_v60 }
  0x9a   : > { %948 = vmatpush1.bf16.msra.mxu0 %v947_v1  ;;  %1001 = vmatpush1.bf16.msra.mxu1 %v947_v1 }
  0x9b   : > { %950 = vmatprep.subr.bf16.mxu0 %v949_v2  ;;  %986 = vmatprep.subr.bf16.mxu1 %v949_v2 }
  0x9e   : > { %952 = vmatpush1.bf16.msra.mxu0 %v951_v7  ;;  %1002 = vmatpush1.bf16.msra.mxu1 %v951_v7 }
  0x9f   : > { %954 = vmatprep.subr.bf16.mxu0 %v953_v8  ;;  %987 = vmatprep.subr.bf16.mxu1 %v953_v8 }
  0xa2   : > { %956 = vmatpush1.bf16.msra.mxu0 %v955_v13  ;;  %1003 = vmatpush1.bf16.msra.mxu1 %v955_v13 }
  0xa3   : > { %958 = vmatprep.subr.bf16.mxu0 %v957_v14  ;;  %988 = vmatprep.subr.bf16.mxu1 %v957_v14 }
  0xa6   : > { %960 = vmatpush1.bf16.msra.mxu0 %v959_v19  ;;  %1004 = vmatpush1.bf16.msra.mxu1 %v959_v19 }
  0xa7   : > { %962 = vmatprep.subr.bf16.mxu0 %v961_v20  ;;  %989 = vmatprep.subr.bf16.mxu1 %v961_v20 }
  0xaa   : > { %964 = vmatpush1.bf16.msra.mxu0 %v963_v25  ;;  %1005 = vmatpush1.bf16.msra.mxu1 %v963_v25 }
  0xab   : > { %966 = vmatprep.subr.bf16.mxu0 %v965_v26  ;;  %990 = vmatprep.subr.bf16.mxu1 %v965_v26 }
  0xae   : > { %968 = vmatpush1.bf16.msra.mxu0 %v967_v31  ;;  %1006 = vmatpush1.bf16.msra.mxu1 %v967_v31 }
  0xaf   : > { %970 = vmatprep.subr.bf16.mxu0 %v969_v32  ;;  %991 = vmatprep.subr.bf16.mxu1 %v969_v32 }
  0xb2   : > { %972 = vmatpush1.bf16.msra.mxu0 %v971_v37  ;;  %1007 = vmatpush1.bf16.msra.mxu1 %v971_v37 }
  0xb3   : > { %974 = vmatprep.subr.bf16.mxu0 %v973_v38  ;;  %992 = vmatprep.subr.bf16.mxu1 %v973_v38 }
  0xb6   : > { %976 = vmatpush1.bf16.msra.mxu0 %v975_v41  ;;  %1008 = vmatpush1.bf16.msra.mxu1 %v975_v41 }
  0xb9   : > { %570 = vmatmul.mubr.f32.vlgmr.msra.gmra.mrb[0].mxu0 %v421_v42  ;;  %582 = vmatmul.mubr.f32.vlgmr.msra.gmra.mrb[0].mxu1 %v425_v43 }
  0xba   : > { %575 = vmatprep.mubr.f32.mxu0 %v424_v44  ;;  %587 = vmatprep.mubr.f32.mxu1 %v428_v45 }
  0xbd   : > { %576 = vmatmul.mubr.f32.gmra.mrb[2].mxu0 %v423_v46  ;;  %588 = vmatmul.mubr.f32.gmra.mrb[2].mxu1 %v427_v47 }
 0x18c   : > { %v571_v54 = vpop.f32.mrb[0].mxu0  ;;  %v583_v56 = vpop.f32.mrb[0].mxu1 }
 0x18d   : > { %v573_v57 = vpop.f32.mrb[1].mxu0  ;;  %v585_v58 = vpop.f32.mrb[1].mxu1  ;;  %v1579_v59 = vadd.f32 %v571_v54, %v498_v53  ;;  %v1583_v63 = vadd.f32 %v583_v56, %v498_v53 }
 0x18e   : > { %v1581_v60 = vadd.f32 %v573_v57, %v502_v55  ;;  %v1589_v4 = vadd.f32 %v585_v58, %v502_v55 }
 0x18f   : > { %v612_v7 = vmul.f32 %v1579_v59, %v1579_v59  ;;  %v616_v13 = vmul.f32 %v1583_v63, %v1583_v63 }
 0x190   : > { %v577_v61 = vpop.f32.mrb[2].mxu0  ;;  %v589_v62 = vpop.f32.mrb[2].mxu1  ;;  %v613_v10 = vmul.f32 %v1581_v60, %v1581_v60  ;;  %v617_v17 = vmul.f32 %v1589_v4, %v1589_v4 }
 0x191   : > { %v1585_v0 = vadd.f32 %v577_v61, %v498_v53  ;;  %v579_v1 = vpop.f32.mrb[3].mxu0  ;;  %v1587_v2 = vadd.f32 %v589_v62, %v498_v53  ;;  %v591_v3 = vpop.f32.mrb[3].mxu1 }
 0x192   : > { %v1591_v5 = vadd.f32 %v579_v1, %v502_v55  ;;  %v1593_v6 = vadd.f32 %v591_v3, %v502_v55 }
 0x193   : > { %v594_v8 = vadd.f32 %v1585_v0, %v1579_v59  ;;  %v614_v9 = vmul.f32 %v1585_v0, %v1585_v0  ;;  %v618_v16 = vmul.f32 %v1587_v2, %v1587_v2 }
 0x194   : > { %v603_v11 = vadd.f32 %v1591_v5, %v1581_v60  ;;  %v615_v12 = vmul.f32 %v1591_v5, %v1591_v5  ;;  %v619_v20 = vmul.f32 %v1593_v6, %v1593_v6 }
 0x195   : > { %v620_v14 = vadd.f32 %v614_v9, %v612_v7  ;;  %v595_v15 = vadd.f32 %v594_v8, %v1583_v63 }
 0x196   : > { %v629_v18 = vadd.f32 %v615_v12, %v613_v10  ;;  %v604_v19 = vadd.f32 %v603_v11, %v1589_v4  ;;  %v1258_v10 = vmov 1966171168  }
 0x197   : > { %v596_v21 = vadd.f32 %v595_v15, %v1587_v2  ;;  %v621_v22 = vadd.f32 %v620_v14, %v616_v13  ;;  %v657_v11 = vunpack.c.l.s4 %v1258_v10 }
 0x198   : > { %v605_v23 = vadd.f32 %v604_v19, %v1593_v6  ;;  %v630_v24 = vadd.f32 %v629_v18, %v617_v17  ;;  %v652_v18 = vld [vmem:[%s375_s0] sm:$0x3] }
 0x199   : > { %v597_v25 = vrot.slane %v596_v21, 4  ;;  %v622_v26 = vadd.f32 %v621_v22, %v618_v16  ;;  %v658_v12 = vunpack.c.0.s8 %v657_v11 }
 0x19a   : > { %v606_v27 = vrot.slane %v605_v23, 4  ;;  %v631_v28 = vadd.f32 %v630_v24, %v619_v20 }
 0x19b   : > { %v598_v29 = vadd.f32 %v597_v25, %v596_v21  ;;  %v623_v30 = vrot.slane %v622_v26, 4  ;;  %v661_v14 = vsub.s32 %v658_v12, %v1564_v49 }
 0x19c   : > { %v607_v31 = vadd.f32 %v606_v27, %v605_v23  ;;  %v632_v32 = vrot.slane %v631_v28, 4 }
 0x19d   : > { %v599_v33 = vrot.slane %v598_v29, 2  ;;  %v624_v34 = vadd.f32 %v623_v30, %v622_v26 }
 0x19e   : > { %v608_v35 = vrot.slane %v607_v31, 2  ;;  %v633_v36 = vadd.f32 %v632_v32, %v631_v28 }
 0x19f   : > { %v600_v37 = vadd.f32 %v599_v33, %v598_v29  ;;  %v625_v38 = vrot.slane %v624_v34, 2 }
 0x1a0   : > { %v609_v39 = vadd.f32 %v608_v35, %v607_v31  ;;  %v634_v40 = vrot.slane %v633_v36, 2 }
 0x1a1   : > { %v601_v41 = vrot.slane %v600_v37, 1  ;;  %v626_v42 = vadd.f32 %v625_v38, %v624_v34 }
 0x1a2   : > { %v610_v43 = vrot.slane %v609_v39, 1  ;;  %v635_v44 = vadd.f32 %v634_v40, %v633_v36 }
 0x1a3   : > { %v602_v45 = vadd.f32 %v601_v41, %v600_v37  ;;  %v627_v46 = vrot.slane %v626_v42, 1 }
 0x1a4   : > { %v611_v47 = vadd.f32 %v610_v43, %v609_v39  ;;  %v636_v48 = vrot.slane %v635_v44, 1 }
 0x1a5   : > { %v628_v51 = vadd.f32 %v627_v46, %v626_v42  ;;  %v638_v53 = vmul.f32 0.03125, %v602_v45 }
 0x1a6   : > { %v637_v54 = vadd.f32 %v636_v48, %v635_v44  ;;  %v639_v55 = vmul.f32 0.03125, %v611_v47 }
 0x1a7   : > { %v640_v56 = vmul.f32 0.03125, %v628_v51  ;;  %v642_v57 = vmul.f32 %v638_v53, %v638_v53 }
 0x1a8   : > { %v641_v58 = vmul.f32 0.03125, %v637_v54  ;;  %v643_v61 = vmul.f32 %v639_v55, %v639_v55 }
 0x1a9   : > { %v644_v62 = vsub.f32 %v640_v56, %v642_v57 }
 0x1aa   : > { %v645_v1 = vsub.f32 %v641_v58, %v643_v61 }
 0x1ab   : > { %v646_v3 = vmax.f32 %v644_v62, 0.0 }
 0x1ac   : > { %v647_v7 = vmax.f32 %v645_v1, 0.0 }
 0x1ad   : > { %v648_v8 = vadd.f32 1e-05, %v646_v3 }
 0x1ae   : > { %v649_v9 = vadd.f32 1e-05, %v647_v7 }
 0x1af   : > { %1096 = vrsqrt.f32 %v648_v8 }
 0x1b0   : > { %1098 = vrsqrt.f32 %v649_v9 }
 0x1b9   : > { %v1097_v13 = vpop.eup %1096 }
 0x1ba   : > { %v1099_v15 = vpop.eup %1098 }
 0x1bb   : > { %v655_v16 = vcombine.low %v1097_v13, %v1099_v15 }
 0x1bd   : > { %v662_v17 = vrot.slane %v655_v16, %v661_v14 }
 0x1bf   : > { %v669_v19 = vrot.slane %v662_v17, %v661_v14 }
 0x1c1   : > { %v671_v20 = vmul.f32 %v669_v19, %v652_v18 }
 0x1c3   : > { %v677_v21 = vrot.slane %v671_v20, %v1567_v50  ;;  %v681_v22 = vrot.slane %v671_v20, %v1575_v52 }
 0x1c5   : > { %v684_v23 = vmul.f32 %v677_v21, %v638_v53  ;;  %v685_v24 = vmul.f32 %v681_v22, %v639_v55  ;;  %v705_v25 = vmul.f32 %v677_v21, %v1579_v59  ;;  %v706_v49 = vmul.f32 %v681_v22, %v1581_v60  ;;  %v672_v59 = vld [vmem:[%s386_s15] sm:$0x3] }
 0x1c6   : > { %v707_v26 = vmul.f32 %v677_v21, %v1585_v0  ;;  %v708_v27 = vmul.f32 %v681_v22, %v1591_v5  ;;  %v709_v28 = vmul.f32 %v677_v21, %v1583_v63  ;;  %v710_v29 = vmul.f32 %v681_v22, %v1589_v4 }
 0x1c7   : > { %v688_v30 = vcombine.low %v684_v23, %v685_v24  ;;  %v711_v31 = vmul.f32 %v677_v21, %v1587_v2  ;;  %v712_v32 = vmul.f32 %v681_v22, %v1593_v6 }
 0x1c9   : > { %v695_v33 = vrot.slane %v688_v30, %v661_v14 }
 0x1cb   : > { %v702_v60 = vrot.slane %v695_v33, %v661_v14 }
 0x1cd   : > { %v704_v34 = vsub.f32 %v672_v59, %v702_v60 }
 0x1cf   : > { %v717_v0 = vrot.slane %v704_v34, %v1567_v50  ;;  %v721_v5 = vrot.slane %v704_v34, %v1575_v52 }
 0x1d1   : > { %v724_v63 = vadd.f32 %v717_v0, %v705_v25  ;;  %v725_v4 = vadd.f32 %v721_v5, %v706_v49  ;;  %v726_v35 = vadd.f32 %v717_v0, %v707_v26  ;;  %v727_v2 = vadd.f32 %v721_v5, %v708_v27 }
 0x1d2   : > { %v728_v6 = vadd.f32 %v717_v0, %v709_v28  ;;  %v729_v36 = vadd.f32 %v721_v5, %v710_v29  ;;  %v730_v37 = vadd.f32 %v717_v0, %v711_v31  ;;  %v731_v38 = vadd.f32 %v721_v5, %v712_v32 }
 0x1d3   : > { %v732_v39 = vmax.f32 %v724_v63, 0.0  ;;  %v733_v50 = vmax.f32 %v725_v4, 0.0  ;;  %v734_v40 = vmax.f32 %v726_v35, 0.0  ;;  %v735_v52 = vmax.f32 %v727_v2, 0.0 }
 0x1d4   : > { %v736_v41 = vmax.f32 %v728_v6, 0.0  ;;  %v737_v42 = vmax.f32 %v729_v36, 0.0  ;;  %v738_v43 = vmax.f32 %v730_v37, 0.0  ;;  %v739_v44 = vmax.f32 %v731_v38, 0.0 }
 0x1d5   : > { %740 = vst [vmem:[%s1487_s8] sm:$0xff] %v732_v39  ;;  %741 = vst [vmem:[%s1487_s8 + $0x8] sm:$0xff] %v733_v50 }
 0x1d6   : > { %742 = vst [vmem:[%s1487_s8 + $0x10] sm:$0xff] %v734_v40  ;;  %743 = vst [vmem:[%s1487_s8 + $0x18] sm:$0xff] %v735_v52 }
 0x1d7   : > { %744 = vst [vmem:[%s1487_s8 + $0x20] sm:$0xff] %v736_v41  ;;  %745 = vst [vmem:[%s1487_s8 + $0x28] sm:$0xff] %v737_v42 }
 0x1d8   : > { %746 = vst [vmem:[%s1487_s8 + $0x30] sm:$0xff] %v738_v43  ;;  %747 = vst [vmem:[%s1487_s8 + $0x38] sm:$0xff] %v739_v44 }
 0x1d9 PF: > { %s912_s11 = sshll.u32 %s1327_s25, 8  ;;  %s762_s6 = sshll.u32 %s1487_s8, 4  ;;  %s1657_s6 = int_to_ptr.vmem [resolvable:$true] %s762_s6 }
 0x1da   : > { %s1654_s9 = scalar_lea.hbm %s1717_s5, %s912_s11  ;;  %s1661_s10 = scalar_lea.sflag [#allocation4], %s351_s30 }
 0x1db   : > { %s1158_s12 = scalar_lea.vmem %s1657_s6, 1024  ;;  %p1743_p2 = scmp.ne.s32.totalorder %s1728_s28, 0 }
 0x1dc   : > { %p1159_p0 = scmp.ne.s32.totalorder %s1657_s6, %s1158_s12  ;;  %s1259_s25 = smov [#allocation7]  }
 0x1dd   : > { %s1162_s16 = sshll.u32 %s1259_s25, 4  ;;  %s1163_s16 = int_to_ptr.vmem [resolvable:$false] %s1162_s16 }
 0x1de   : > { %p1160_p5 = pnand %p1159_p0, %p1743_p2  ;;  %s1164_s14 = scalar_lea.vmem %s1163_s16, 2048 }
 0x1df   : > { %p1165_p12 = scmp.lt.s32.totalorder %s1657_s6, %s1163_s16  ;;  %p1166_p1 = scmp.lt.s32.totalorder %s1164_s14, %s1158_s12 }
 0x1e0   : > { %p1161_p8 = pneg %p1160_p5 }
 0x1e1   : > { %p1167_p7 = por %p1166_p1, %p1165_p12 }
 0x1e3   : > { %p1168_p9 = pnand %p1167_p7, %p1161_p8 }
 0x1e5   : > { %1171 = shalt.err (!%p1168_p9)
}
 0x1e6   : > { %s1172_s30 = scalar_lea.hbm %s1654_s9, 1024  ;;  %s1176_s21 = scalar_lea.hbm %s1717_s5, 2048 }
 0x1e7   : > { %p1173_p4 = scmp.ne.s32.totalorder %s1654_s9, %s1172_s30  ;;  %p1177_p10 = scmp.lt.u32.totalorder %s1654_s9, %s1717_s5 }
 0x1e8   : > { %p1178_p11 = scmp.lt.u32.totalorder %s1176_s21, %s1172_s30  ;;  %p1180_p0 = scmp.lt.u32.totalorder %s1172_s30, %s1654_s9 }
 0x1e9   : > { %p1174_p6 = pnand %p1173_p4, %p1743_p2 }
 0x1ea   : > { %p1179_p13 = por %p1178_p11, %p1177_p10 }
 0x1eb   : > { %p1175_p3 = pneg %p1174_p6 }
 0x1ec   : > { %p1181_p5 = por %p1180_p0, %p1179_p13 }
 0x1ee   : > { %p1182_p8 = pnand %p1181_p5, %p1175_p3 }
 0x1f0   : > { %1185 = shalt.err (!%p1182_p8)
}
 0x1f1   : > { %s1260_s11 = smov 256   ;;  %s1261_s13 = smov 512  }
 0x1f2   : > { %s1262_s15 = smov 16  }
 0x1f3   : > { %1015 = dma.vmem_to_hbm [thread:$0]  (%p1743_p2), %s1657_s6, 1024, %s1654_s9, %s1661_s10, %s1260_s11, %s1261_s13, %s1262_s15  }
 0x1f4 PF: > { %s777_s12 = sand.u32 1, %s1228_s18   ;;  %p1744_p12 = scmp.ne.s32.totalorder %s1729_s29, 0 }
 0x1f5   : > { %p1745_p1 = scmp.ge.s32.totalorder %s1252_s24, 2  ;;  %s778_s25 = scalar_lea.sflag [#allocation4], %s777_s12 }
 0x1f7   : > { %p1026_p7 = pnand %p1745_p1, %p1744_p12 }
 0x1f9   : > { %1223 = dma.done.wait (!%p1026_p7), %s778_s25, 1024  }
 0x1fa   : > { %1225 = vsyncadd (!%p1026_p7), %s778_s25, 4294966272  ;;  %s1746_s24 = sld [smem:[#allocation11_spill]]  ;;  %s1747_s18 = smov %s1232_s19 }
 0x1fb   : > { %s1748_s19 = smov %s1236_s20  ;;  %s1749_s20 = smov %s1406_s7 }
 0x1fc   : > { %s1750_s21 = smov %s1244_s22  ;;  %s1751_s22 = smov %s1248_s23 }
 0x1fd   : > { %s1752_s23 = smov %s1409_s17 }
 0x200   : > { %p19_p2 = scmp.ge.s32.totalorder %s1746_s24, 4  }
 0x202   :  { %21 = sbr.rel (!%p19_p2) target bundleno = 10 (0xa), region = 108 }
 0x209   :  { %783 = vsyncpa [#allocation3], 1 }
 0x20a   :  { %785 = vsyncpa [#allocation3 + $0x1], 1 }
 0x20b   :  { %786 = vsyncpa [#allocation6], 1 }
 0x20c   :  { %788 = vsyncpa [#allocation6 + $0x1], 1 }
 0x20d   :  { %789 = vsyncpa [#allocation4], 1 }
 0x20e   :  { %791 = vsyncpa [#allocation4 + $0x1], 1 }

</bundles_post_ra>
